<compile_context>
chip_gen: v5e
topology: v5e:2x2
jax: 0.10.0
libtpu: 0.0.40
codegen_flags: <defaults>
</compile_context>

<pallas_src>
import jax
import jax.numpy as jnp
from jax.experimental import pallas as pl
from jax.experimental.pallas import tpu as pltpu


def _pick_tile(total, desired, align):
    """Largest tile <= desired that is a multiple of `align` and divides `total`;
    falls back to the full extent (always a legal block dim)."""
    if total <= desired:
        return total
    t = (desired // align) * align
    while t >= align:
        if total % t == 0:
            return t
        t -= align
    return total


# ---------------------------------------------------------------------------
# Kernel 1: router — fused route/noise linear + noisy gating + softmax
# ---------------------------------------------------------------------------
def _router_kernel(x_ref, w_ref, b_ref, noise_ref, prob_ref):
    n_experts = prob_ref.shape[-1]
    x = x_ref[...]                                                       # (tm, H)
    # Single MXU pass: columns [:E] are the route logits, [E:] the noise logits.
    z = jnp.dot(x, w_ref[...], preferred_element_type=jnp.float32) + b_ref[...]
    route = z[:, :n_experts]
    noise_log = z[:, n_experts:]
    route = route + noise_ref[...] * jnp.logaddexp(noise_log, 0.0)       # randn * softplus
    m = jnp.max(route, axis=-1, keepdims=True)                           # softmax over experts
    e = jnp.exp(route - m)
    prob_ref[...] = e / jnp.sum(e, axis=-1, keepdims=True)


def router_probs(x, w_fused, b_fused, noise, n_experts, tm=512):
    T, H = x.shape
    E2 = w_fused.shape[1]
    tm = _pick_tile(T, tm, 8)
    return pl.pallas_call(
        _router_kernel,
        out_shape=jax.ShapeDtypeStruct((T, n_experts), jnp.float32),
        grid=(T // tm,),
        in_specs=[
            pl.BlockSpec((tm, H), lambda i: (i, 0)),
            pl.BlockSpec((H, E2), lambda i: (0, 0)),
            pl.BlockSpec((1, E2), lambda i: (0, 0)),
            pl.BlockSpec((tm, n_experts), lambda i: (i, 0)),
        ],
        out_specs=pl.BlockSpec((tm, n_experts), lambda i: (i, 0)),
        compiler_params=pltpu.CompilerParams(
            dimension_semantics=("parallel",)),
    )(x, w_fused, b_fused, noise)


# ---------------------------------------------------------------------------
# Kernel 2: combine — combined[t, v] = sum_e w[t, e] * logits[e, t, v]
# Memory-bound: wide lane-dense vocab tiles, logits cast per-tile in-kernel.
# ---------------------------------------------------------------------------
def _combine_kernel(w_ref, logits_ref, o_ref):
    w = w_ref[...]                                          # (tm, E) f32
    n_experts = logits_ref.shape[0]                         # static, tiny
    # Initialize accumulator from expert 0 (no zero fill), unrolled over E.
    acc = w[:, 0:1] * logits_ref[0].astype(jnp.float32)
    for e in range(1, n_experts):
        acc = acc + w[:, e:e + 1] * logits_ref[e].astype(jnp.float32)
    o_ref[...] = acc.astype(o_ref.dtype)


def combine_logits(weights, logits, tm=256, vt=512, out_dtype=jnp.float32):
    E, T, V = logits.shape
    tm = _pick_tile(T, tm, 8)
    vt = _pick_tile(V, vt, 128)
    return pl.pallas_call(
        _combine_kernel,
        out_shape=jax.ShapeDtypeStruct((T, V), out_dtype),
        grid=(T // tm, V // vt),
        in_specs=[
            pl.BlockSpec((tm, E), lambda i, j: (i, 0)),
            pl.BlockSpec((E, tm, vt), lambda i, j: (0, i, j)),
        ],
        out_specs=pl.BlockSpec((tm, vt), lambda i, j: (i, j)),
        compiler_params=pltpu.CompilerParams(
            dimension_semantics=("parallel", "parallel"),
            vmem_limit_bytes=48 * 1024 * 1024),
    )(weights, logits)


# ---------------------------------------------------------------------------
# MOELayer wrapper (parameters initialized deterministically in-script)
# ---------------------------------------------------------------------------
class MOELayerPallas:
    def __init__(self, embed_dim, n_experts,
                 domain_weight_if_domain_given=0.5, residual_threshold=0.5,
                 key=None):
        key = jax.random.PRNGKey(0) if key is None else key
        k1, k2, k3, k4 = jax.random.split(key, 4)
        bound = 1.0 / (embed_dim ** 0.5)        # mimic nn.Linear default init
        w_route = jax.random.uniform(k1, (embed_dim, n_experts), jnp.float32, -bound, bound)
        b_route = jax.random.uniform(k2, (1, n_experts), jnp.float32, -bound, bound)
        w_noise = jax.random.uniform(k3, (embed_dim, n_experts), jnp.float32, -bound, bound)
        b_noise = jax.random.uniform(k4, (1, n_experts), jnp.float32, -bound, bound)
        # Fuse route|noise projections: one (H, 2E) weight -> single MXU pass in-kernel.
        self.w_fused = jnp.concatenate([w_route, w_noise], axis=1)
        self.b_fused = jnp.concatenate([b_route, b_noise], axis=1)
        self.n_experts = n_experts
        self.domain_weight = domain_weight_if_domain_given
        self.residual_threshold = residual_threshold

    def __call__(self, embedding, logits, domain_label=None, noise_key=None):
        B, S, H = embedding.shape
        E = logits.shape[0]
        V = logits.shape[-1]
        T = B * S
        x = embedding.reshape(T, H).astype(jnp.float32)

        # torch.randn_like replaced by deterministic jax.random noise
        noise_key = jax.random.PRNGKey(1) if noise_key is None else noise_key
        noise = jax.random.normal(noise_key, (T, E), jnp.float32)

        route_prob = router_probs(x, self.w_fused, self.b_fused, noise,
                                  self.n_experts).reshape(B, S, E)

        if domain_label is not None:
            domain = domain_label
            if domain.ndim == 1:
                domain = jnp.broadcast_to(domain[:, None], (B, S))
            mask = jax.nn.one_hot(domain, E, dtype=jnp.float32)
            residual = route_prob * (1.0 - mask)
            residual = residual / (residual.sum(-1, keepdims=True) + 1e-6)
            residual = residual * (1.0 - self.domain_weight)
            route_prob_revised = residual + mask * self.domain_weight
            threshold = self.domain_weight + self.residual_threshold
        else:
            route_prob_revised = route_prob
            threshold = self.residual_threshold

        # threshold-based top-k selection over the tiny expert axis (glue).
        sorted_prob = -jnp.sort(-route_prob_revised, axis=-1)            # descending
        sorted_idx = jnp.argsort(-route_prob_revised, axis=-1)
        cum = jnp.cumsum(sorted_prob, axis=-1)
        keep = cum < threshold
        keep = keep.at[..., 0].set(True)
        topk_num = keep.sum(-1)
        max_k = topk_num.max()
        # static-shape equivalent of slicing [..., :max_k]: mask positions >= max_k
        # (matches PyTorch's batch-global max_k slice + renormalize)
        pos_keep = (jnp.arange(E) < max_k).astype(jnp.float32)           # (E,)
        kept_w = sorted_prob * pos_keep
        kept_w = kept_w / (kept_w.sum(-1, keepdims=True) + 1e-6)
        # scatter weights back to original expert order (replaces torch.gather path)
        onehot = jax.nn.one_hot(sorted_idx, E, dtype=jnp.float32)        # (B,S,E,E)
        w_orig = jnp.einsum('bsj,bsje->bse', kept_w, onehot)

        weights = w_orig.reshape(T, E)
        # No host-side upcast: logits stay in native dtype, cast per-tile in-kernel.
        logits_flat = logits.reshape(E, T, V)
        combined = combine_logits(weights, logits_flat).reshape(B, S, V)
        return combined, route_prob, route_prob_revised


if __name__ == "__main__":
    B, S, H, E, V = 2, 8, 32, 4, 256
    key = jax.random.PRNGKey(0)
    k_emb, k_log, k_params, k_noise = jax.random.split(key, 4)

    embedding = jax.random.normal(k_emb, (B, S, H), jnp.float32)
    # logits: stacked per-expert vocab logits, shape (n_experts, B, S, V)
    logits = jax.random.normal(k_log, (E, B, S, V), jnp.float32)

    layer = MOELayerPallas(H, E, key=k_params)
    combined, route_prob, route_prob_revised = layer(embedding, logits, noise_key=k_noise)
    jax.block_until_ready((combined, route_prob, route_prob_revised))

    assert combined.shape == (B, S, V)
    assert route_prob.shape == (B, S, E)
    assert route_prob_revised.shape == (B, S, E)
    # route_prob rows should sum to ~1
    assert bool(jnp.allclose(route_prob.sum(-1), 1.0, atol=1e-5))

    # cross-check combine kernel against a pure-JAX reference
    wts = jnp.einsum('bsj,bsje->bse',
                     (lambda sp: sp / (sp.sum(-1, keepdims=True) + 1e-6))(
                         -jnp.sort(-route_prob_revised, -1)
                         * (jnp.arange(E) < ((jnp.cumsum(-jnp.sort(-route_prob_revised, -1), -1)
                                              < 0.5).at[..., 0].set(True).sum(-1).max())
                            ).astype(jnp.float32)),
                     jax.nn.one_hot(jnp.argsort(-route_prob_revised, -1), E, dtype=jnp.float32))
    ref = jnp.einsum('bse,ebsv->bsv', wts, logits)
    assert bool(jnp.allclose(combined, ref, atol=1e-4, rtol=1e-4))
    print("KERNEL_OK")
</pallas_src>

<mosaic_0001>
module attributes {stable_mosaic.version = 11 : i64} {
  func.func @_router_kernel(%arg0: i32, %arg1: memref<16x32xf32, #tpu.memory_space<vmem>>, %arg2: memref<32x8xf32, #tpu.memory_space<vmem>>, %arg3: memref<1x8xf32, #tpu.memory_space<vmem>>, %arg4: memref<16x4xf32, #tpu.memory_space<vmem>>, %arg5: memref<16x4xf32, #tpu.memory_space<vmem>>) attributes {dimension_semantics = [#tpu.dimension_semantics<parallel>], iteration_bounds = array<i64: 1>, scalar_prefetch = 0 : i64, scratch_operands = 0 : i64, tpu.core_type = #tpu.core_type<tc>, window_params = [{transform_indices = @transform_0, window_bounds = array<i64: 16, 32>}, {pipeline_mode = #tpu.pipeline_mode<synchronous>, transform_indices = @transform_1, window_bounds = array<i64: 32, 8>}, {pipeline_mode = #tpu.pipeline_mode<synchronous>, transform_indices = @transform_2, window_bounds = array<i64: 1, 8>}, {transform_indices = @transform_3, window_bounds = array<i64: 16, 4>}, {transform_indices = @transform_4, window_bounds = array<i64: 16, 4>}]} {
    %c0 = arith.constant 0 : index
    %c0_0 = arith.constant 0 : index
    %0 = vector.load %arg1[%c0, %c0_0] : memref<16x32xf32, #tpu.memory_space<vmem>>, vector<16x32xf32>
    %c0_1 = arith.constant 0 : index
    %c0_2 = arith.constant 0 : index
    %1 = vector.load %arg2[%c0_1, %c0_2] : memref<32x8xf32, #tpu.memory_space<vmem>>, vector<32x8xf32>
    %cst = arith.constant dense<0.000000e+00> : vector<16x8xf32>
    %2 = tpu.matmul %0, %1, %cst {dimension_numbers = #tpu.dot_dimension_numbers<[1], [0], [0], [1], [0, 0, 1, 1], [], []>} : vector<16x32xf32>, vector<32x8xf32>, vector<16x8xf32> -> vector<16x8xf32>
    %c0_3 = arith.constant 0 : index
    %c0_4 = arith.constant 0 : index
    %3 = vector.load %arg3[%c0_3, %c0_4] : memref<1x8xf32, #tpu.memory_space<vmem>>, vector<1x8xf32>
    %4 = vector.broadcast %3 : vector<1x8xf32> to vector<16x8xf32>
    %5 = arith.addf %2, %4 : vector<16x8xf32>
    %6 = vector.extract_strided_slice %5 {offsets = [0, 0], sizes = [16, 4], strides = [1, 1]} : vector<16x8xf32> to vector<16x4xf32>
    %7 = vector.extract_strided_slice %5 {offsets = [0, 4], sizes = [16, 4], strides = [1, 1]} : vector<16x8xf32> to vector<16x4xf32>
    %c0_5 = arith.constant 0 : index
    %c0_6 = arith.constant 0 : index
    %8 = vector.load %arg4[%c0_5, %c0_6] : memref<16x4xf32, #tpu.memory_space<vmem>>, vector<16x4xf32>
    %cst_7 = arith.constant 0.000000e+00 : f32
    %9 = vector.broadcast %cst_7 : f32 to vector<16x4xf32>
    %10 = arith.maximumf %7, %9 : vector<16x4xf32>
    %11 = vector.broadcast %cst_7 : f32 to vector<16x4xf32>
    %12 = arith.subf %7, %11 : vector<16x4xf32>
    %13 = arith.cmpf one, %12, %12 : vector<16x4xf32>
    %14 = vector.broadcast %cst_7 : f32 to vector<16x4xf32>
    %15 = arith.addf %7, %14 : vector<16x4xf32>
    %16 = math.absf %12 : vector<16x4xf32>
    %cst_8 = arith.constant 0.000000e+00 : f32
    %17 = vector.broadcast %cst_8 : f32 to vector<16x4xf32>
    %18 = arith.subf %17, %16 : vector<16x4xf32>
    %19 = math.exp %18 : vector<16x4xf32>
    %20 = math.log1p %19 : vector<16x4xf32>
    %21 = arith.addf %10, %20 : vector<16x4xf32>
    %22 = arith.select %13, %15, %21 : vector<16x4xi1>, vector<16x4xf32>
    %23 = arith.mulf %8, %22 : vector<16x4xf32>
    %24 = arith.addf %6, %23 : vector<16x4xf32>
    %cst_9 = arith.constant dense<0xFF800000> : vector<16xf32>
    %25 = vector.multi_reduction <maximumf>, %24, %cst_9 [1] : vector<16x4xf32> to vector<16xf32>
    %26 = vector.shape_cast %25 : vector<16xf32> to vector<16x1xf32>
    %27 = vector.broadcast %26 : vector<16x1xf32> to vector<16x4xf32>
    %28 = arith.subf %24, %27 : vector<16x4xf32>
    %29 = math.exp %28 : vector<16x4xf32>
    %cst_10 = arith.constant dense<0.000000e+00> : vector<16xf32>
    %30 = vector.multi_reduction <add>, %29, %cst_10 [1] : vector<16x4xf32> to vector<16xf32>
    %31 = vector.shape_cast %30 : vector<16xf32> to vector<16x1xf32>
    %32 = vector.broadcast %31 : vector<16x1xf32> to vector<16x4xf32>
    %33 = arith.divf %29, %32 : vector<16x4xf32>
    %c0_11 = arith.constant 0 : index
    %c0_12 = arith.constant 0 : index
    %34 = vector.load %arg5[%c0_11, %c0_12] : memref<16x4xf32, #tpu.memory_space<vmem>>, vector<16x4xf32>
    tpu.vector_store %arg5[%c0_11, %c0_12], %33 {strides = array<i32>} : memref<16x4xf32, #tpu.memory_space<vmem>>, vector<16x4xf32>,
    return
  }
  func.func @transform_0(%arg0: i32) -> (i32, i32) {
    %c0_i32 = arith.constant 0 : i32
    %c0_i32_0 = arith.constant 0 : i32
    return %arg0, %c0_i32 : i32, i32
  }
  func.func @transform_1(%arg0: i32) -> (i32, i32) {
    %c0_i32 = arith.constant 0 : i32
    %c0_i32_0 = arith.constant 0 : i32
    %c0_i32_1 = arith.constant 0 : i32
    return %c0_i32, %c0_i32_0 : i32, i32
  }
  func.func @transform_2(%arg0: i32) -> (i32, i32) {
    %c0_i32 = arith.constant 0 : i32
    %c0_i32_0 = arith.constant 0 : i32
    %c0_i32_1 = arith.constant 0 : i32
    return %c0_i32, %c0_i32_0 : i32, i32
  }
  func.func @transform_3(%arg0: i32) -> (i32, i32) {
    %c0_i32 = arith.constant 0 : i32
    %c0_i32_0 = arith.constant 0 : i32
    return %arg0, %c0_i32 : i32, i32
  }
  func.func @transform_4(%arg0: i32) -> (i32, i32) {
    %c0_i32 = arith.constant 0 : i32
    %c0_i32_0 = arith.constant 0 : i32
    return %arg0, %c0_i32 : i32, i32
  }
}

</mosaic_0001>

<bundles_post_ra>
// kernel: tpu_custom_call.1
= control target key start
LH: loop header
LB: loop body
LE: loop exit
PB: predicated region body
PF: predicated region fallthrough
CT: control target
= control target key end

     0   :  { %vm27_vm0 = vcmask 261120   ;;  %vm107_vm5 = vcmask 31744   ;;  %s251_s1 = inlined_call_operand.vmem [shape: f32[32,8], index: 1, kind: input, shape index: {}]   ;;  %s252_s2 = inlined_call_operand.vmem [shape: f32[1,8], index: 2, kind: input, shape index: {}]   ;;  %s253_s0 = inlined_call_operand.vmem [shape: f32[16,32], index: 0, kind: input, shape index: {}]   ;;  %s254_s3 = inlined_call_operand.vmem [shape: f32[16,4], index: 3, kind: input, shape index: {}]   ;;  %s255_s4 = inlined_call_operand.vmem [shape: f32[16,4], index: 4, kind: output, shape index: {}]  }
   0x1   :  { %v22_v0 = vld [vmem:[%s251_s1 + $0x18] sm:$0xff]  ;;  %v21_v1 = vld [vmem:[%s251_s1 + $0x10] sm:$0xff]  ;;  %v20_v2 = vld [vmem:[%s251_s1 + $0x8] sm:$0xff] }
   0x2   :  { %46 = vmatpush.msra.mxu0 %v22_v0  ;;  %164 = vmatpush.msra.mxu1 %v22_v0  ;;  %v19_v3 = vld [vmem:[%s251_s1] sm:$0xff]  ;;  %v18_v5 = vld [vmem:[%s253_s0 + $0x8] sm:$0xff] }
   0x3   :  { %v17_v4 = vld [vmem:[%s253_s0] sm:$0xff]  ;;  %s186_s0 = smov 124   ;;  %v58_v46 = vld [vmem:[%s254_s3 + $0x8] sm:$0xff] }
   0x4   :  { %47 = vmatpush.msra.mxu0 %v21_v1  ;;  %165 = vmatpush.msra.mxu1 %v21_v1  ;;  %v169_v6 = vld [vmem:[%s252_s2] ss:$0 sm:$0xff] }
   0x5   :  { %v57_v41 = vld [vmem:[%s254_s3] sm:$0xff] }
   0x6   :  { %48 = vmatpush.msra.mxu0 %v20_v2  ;;  %166 = vmatpush.msra.mxu1 %v20_v2 }
   0x8   :  { %49 = vmatpush.msra.mxu0 %v19_v3  ;;  %167 = vmatpush.msra.mxu1 %v19_v3 }
   0x9   :  { %162 = vmatmul.msk.f32.vlgmr.msra.gmra.mxu0 %vm27_vm0, %v17_v4  ;;  %163 = vmatmul.msk.f32.vlgmr.msra.gmra.mxu1 %vm27_vm0, %v18_v5 }
  0x86   :  { %v51_v7 = vpop.f32.mrf.mxu0  ;;  %v54_v8 = vpop.f32.mrf.mxu1 }
  0x87   :  { %v52_v9 = vadd.f32 %v169_v6, %v51_v7  ;;  %v55_v10 = vadd.f32 %v169_v6, %v54_v8 }
  0x89   :  { %v65_v11 = vand.u32 2147483647, %v52_v9  ;;  %v66_v12 = vand.u32 2147483647, %v55_v10  ;;  %v59_v31 = vmax.f32 %v52_v9, 0.0  ;;  %vm61_vm3 = vcmp.ne.f32.partialorder %v52_v9, %v52_v9 }
  0x8a   :  { %v60_v38 = vmax.f32 %v55_v10, 0.0  ;;  %vm62_vm4 = vcmp.ne.f32.partialorder %v55_v10, %v55_v10 }
  0x8b   :  { %v67_v13 = vsub.f32 0.0, %v65_v11  ;;  %v68_v14 = vsub.f32 0.0, %v66_v12 }
  0x8d   :  { %v69_v15 = vmul.f32 1.442695, %v67_v13  ;;  %v71_v16 = vmul.f32 1.442695, %v68_v14 }
  0x8f   :  { %170 = vpow2.f32 %v69_v15 }
  0x90   :  { %172 = vpow2.f32 %v71_v16 }
  0x95   :  { %v171_v17 = vpop.eup %170 }
  0x96   :  { %v173_v18 = vpop.eup %172  ;;  %v73_v19 = vadd.f32 1.0, %v171_v17  ;;  %v76_v20 = vmul.f32 -0.5, %v171_v17  ;;  %v79_v24 = vand.u32 2147483647, %v171_v17 }
  0x97   :  { %v82_v21 = vadd.f32 1.0, %v173_v18  ;;  %v85_v22 = vmul.f32 -0.5, %v173_v18  ;;  %v88_v27 = vand.u32 2147483647, %v173_v18 }
  0x98   :  { %174 = vlog2.f32 %v73_v19  ;;  %v77_v23 = vadd.f32 1.0, %v76_v20  ;;  %vm80_vm1 = vcmp.lt.f32.partialorder %v79_v24, 0.0004427343 }
  0x99   :  { %176 = vlog2.f32 %v82_v21  ;;  %v86_v25 = vadd.f32 1.0, %v85_v22  ;;  %vm89_vm2 = vcmp.lt.f32.partialorder %v88_v27, 0.0004427343 }
  0x9a   :  { %v78_v30 = vmul.f32 %v171_v17, %v77_v23 }
  0x9b   :  { %v87_v34 = vmul.f32 %v173_v18, %v86_v25 }
  0x9e   :  { %v175_v26 = vpop.eup %174 }
  0x9f   :  { %v177_v28 = vpop.eup %176  ;;  %v75_v29 = vmul.f32 0.6931472, %v175_v26 }
  0xa0   :  { %v84_v33 = vmul.f32 0.6931472, %v177_v28 }
  0xa1   :  { %v81_v32 = vsel %vm80_vm1, %v78_v30, %v75_v29 }
  0xa2   :  { %v91_v35 = vadd.f32 %v81_v32, %v59_v31  ;;  %v90_v37 = vsel %vm89_vm2, %v87_v34, %v84_v33 }
  0xa3   :  { %v92_v39 = vadd.f32 %v90_v37, %v60_v38 }
  0xa4   :  { %v93_v36 = vsel %vm61_vm3, %v52_v9, %v91_v35 }
  0xa5   :  { %97 = vrot.lane.b32.xlu0 %v93_v36, %s186_s0  ;;  %v94_v40 = vsel %vm62_vm4, %v55_v10, %v92_v39 }
  0xad   :  { %99 = vrot.lane.b32.xlu0 %v94_v40, %s186_s0 }
 0x117   :  { %v98_v42 = vpop.permute.xlu0 %97 }
 0x118   :  { %v103_v43 = vmul.f32 %v98_v42, %v57_v41 }
 0x11a   :  { %v105_v44 = vadd.f32 %v103_v43, %v52_v9 }
 0x11c   :  { %v108_v45 = vsel %vm107_vm5, %v105_v44, -inf }
 0x11d   :  { %109 = vmax.xlane.f32.xlu1 %v108_v45 }
 0x11f   :  { %v100_v47 = vpop.permute.xlu0 %99 }
 0x120   :  { %v104_v48 = vmul.f32 %v100_v47, %v58_v46 }
 0x122   :  { %v106_v49 = vadd.f32 %v104_v48, %v55_v10 }
 0x124   :  { %v111_v50 = vsel %vm107_vm5, %v106_v49, -inf }
 0x125   :  { %112 = vmax.xlane.f32.xlu1 %v111_v50 }
 0x190   :  { %v110_v51 = vpop.xlane.xlu1 %109 }
 0x191   :  { %v114_v52 = vsub.f32 %v105_v44, %v110_v51 }
 0x193   :  { %v116_v53 = vmul.f32 1.442695, %v114_v52 }
 0x195   :  { %178 = vpow2.f32 %v116_v53 }
 0x198   :  { %v113_v54 = vpop.xlane.xlu1 %112 }
 0x199   :  { %v115_v55 = vsub.f32 %v106_v49, %v113_v54 }
 0x19b   :  { %v179_v56 = vpop.eup %178  ;;  %v118_v57 = vmul.f32 1.442695, %v115_v55 }
 0x19c   :  { %v120_v58 = vsel %vm107_vm5, %v179_v56, 0.0 }
 0x19d   :  { %180 = vpow2.f32 %v118_v57  ;;  %121 = vadd.xlane.f32.xlu2 %v120_v58 }
 0x1a3   :  { %v181_v59 = vpop.eup %180 }
 0x1a4   :  { %v123_v60 = vsel %vm107_vm5, %v181_v59, 0.0 }
 0x1a5   :  { %124 = vadd.xlane.f32.xlu2 %v123_v60 }
 0x210   :  { %v122_v61 = vpop.xlane.xlu2 %121 }
 0x211   :  { %182 = vrcp.f32 %v122_v61  ;;  %v137_v2 = vand.u32 2147483648, %v122_v61  ;;  %v135_v4 = vand.u32 2147483647, %v122_v61  ;;  %vm131_vm7 = vweird.f32 %v122_v61 }
 0x213   :  { %v138_v7 = vor.u32 1.1754944e-38, %v137_v2  ;;  %vm136_vm9 = vcmp.eq.f32.partialorder %v135_v4, 8.507059e+37 }
 0x217   :  { %v183_v62 = vpop.eup %182 }
 0x218   :  { %v127_v63 = vmul.f32 %v183_v62, %v122_v61  ;;  %v125_v0 = vpop.xlane.xlu2 %124  ;;  %vm132_vm6 = vweird.f32 %v183_v62 }
 0x219   :  { %184 = vrcp.f32 %v125_v0  ;;  %vm133_vm8 = vmor %vm131_vm7, %vm132_vm6  ;;  %v152_v13 = vand.u32 2147483648, %v125_v0  ;;  %v150_v15 = vand.u32 2147483647, %v125_v0  ;;  %vm146_vm11 = vweird.f32 %v125_v0 }
 0x21a   :  { %v128_v1 = vsub.f32 1.0, %v127_v63 }
 0x21b   :  { %v153_v17 = vor.u32 1.1754944e-38, %v152_v13  ;;  %vm151_vm13 = vcmp.eq.f32.partialorder %v150_v15, 8.507059e+37 }
 0x21c   :  { %v129_v3 = vmul.f32 %v183_v62, %v128_v1 }
 0x21e   :  { %v130_v5 = vadd.f32 %v183_v62, %v129_v3 }
 0x21f   :  { %v185_v6 = vpop.eup %184 }
 0x220   :  { %v134_v8 = vsel %vm133_vm8, %v183_v62, %v130_v5  ;;  %v142_v9 = vmul.f32 %v185_v6, %v125_v0  ;;  %vm147_vm10 = vweird.f32 %v185_v6 }
 0x221   :  { %v139_v10 = vsel %vm136_vm9, %v138_v7, %v134_v8  ;;  %vm148_vm12 = vmor %vm146_vm11, %vm147_vm10 }
 0x222   :  { %v140_v11 = vmul.f32 %v179_v56, %v139_v10  ;;  %v143_v12 = vsub.f32 1.0, %v142_v9 }
 0x224   :  { %156 = vst.msk [vmem:[%s255_s4] sm:$0xff] %vm107_vm5, %v140_v11  ;;  %v144_v14 = vmul.f32 %v185_v6, %v143_v12 }
 0x226   :  { %v145_v16 = vadd.f32 %v185_v6, %v144_v14 }
 0x228   :  { %v149_v18 = vsel %vm148_vm12, %v185_v6, %v145_v16 }
 0x229   :  { %v154_v19 = vsel %vm151_vm13, %v153_v17, %v149_v18 }
 0x22a   :  { %v155_v20 = vmul.f32 %v181_v59, %v154_v19 }
 0x22c   :  { %157 = vst.msk [vmem:[%s255_s4 + $0x8] sm:$0xff] %vm107_vm5, %v155_v20 }

</bundles_post_ra>
